<compile_context>
chip_gen: v7x
topology: tpu7x:2x2x1
jax: 0.10.0
libtpu: 0.0.40
codegen_flags: <defaults>
</compile_context>

<pallas_src>
import functools

import jax
import jax.numpy as jnp
from jax.experimental import pallas as pl
from jax.experimental.pallas import tpu as pltpu


# ---------------------------------------------------------------------------
# Kernel
# ---------------------------------------------------------------------------
def _netd_kernel(xT_ref, slab_ref, w2_ref, o_ref):
    # xT_ref:   (2, tm)     batch on lanes
    # slab_ref: (ndf, 6)    [w1[:,0], w1[:,1], b1, b2, w3^T, b3(bcast)]
    # w2_ref:   (ndf, ndf)  PyTorch (out, in) layout
    # o_ref:    (1, tm)
    xT = xT_ref[...]
    slab = slab_ref[...]
    w1_0 = slab[:, 0:1]   # (ndf, 1)
    w1_1 = slab[:, 1:2]   # (ndf, 1)
    b1 = slab[:, 2:3]     # (ndf, 1)
    b2 = slab[:, 3:4]     # (ndf, 1)
    w3 = slab[:, 4:5]     # (ndf, 1)
    b3 = slab[0:1, 5:6]   # (1, 1)

    # Layer 1: Linear(2, ndf) + Tanh as two broadcast FMAs on the VPU
    # (a (tm,2)@(2,ndf) matmul would use <1% of the MXU for full push/pop cost).
    h1 = jnp.tanh(w1_0 * xT[0:1, :] + w1_1 * xT[1:2, :] + b1)          # (ndf, tm)

    # Layer 2: Linear(ndf, ndf) + Tanh — the only real contraction, on the MXU.
    h2 = jnp.tanh(
        jnp.dot(w2_ref[...], h1, preferred_element_type=jnp.float32) + b2
    )                                                                   # (ndf, tm)

    # Layer 3: Linear(ndf, 1) + Sigmoid — elementwise multiply + XLU reduction.
    logit = jnp.sum(w3 * h2, axis=0, keepdims=True) + b3                # (1, tm)
    o_ref[...] = jax.nn.sigmoid(logit).astype(o_ref.dtype)


# ---------------------------------------------------------------------------
# Wrapper / tiling policy
# ---------------------------------------------------------------------------
_TM_CAP = 8192  # lanes per grid step; ~4 MiB of f32 activations at ndf=32


def _tensorcores_per_chip():
    """2 for v7x (2 TCs share one Pallas kernel via parallel grid axes), else 1."""
    try:
        kind = jax.devices()[0].device_kind.lower()
    except Exception:
        return 1
    return 2 if "v7" in kind else 1


def _choose_tiling(batch):
    # Pad batch to a multiple of 128 so every store is an unmasked lane-dense vst.
    b_pad = max(128, -(-batch // 128) * 128)
    steps = -(-b_pad // _TM_CAP)                 # ceil: respect the tile cap
    # v7x: make sure both TensorCores get work once the batch is big enough.
    tc = _tensorcores_per_chip()
    if tc > 1 and steps < tc and b_pad >= 512:
        steps = tc
    tm = -(-b_pad // steps)
    tm = -(-tm // 128) * 128                     # round tile up to 128 lanes
    b_pad = tm * steps                           # re-pad so the grid is exact
    return b_pad, tm, steps


def prepare_netd_params(params):
    """Pack params ONCE into (slab, w2) — hoisted out of the per-call path."""
    w1, b1, w2, b2, w3, b3 = params
    ndf = w1.shape[0]
    slab = jnp.concatenate(
        [
            w1,                                                  # (ndf, 2)
            b1[:, None],                                         # (ndf, 1)
            b2[:, None],                                         # (ndf, 1)
            w3.T,                                                # (ndf, 1)
            jnp.broadcast_to(b3.reshape(1, 1), (ndf, 1)),        # (ndf, 1)
        ],
        axis=1,
    )                                                            # (ndf, 6)
    return slab, w2


@functools.partial(jax.jit, donate_argnums=())
def netd_forward(x, slab, w2):
    """Forward pass of _netD. x: (B, 2) f32 -> (B, 1) f32. Fully fused under jit."""
    B = x.shape[0]
    ndf = w2.shape[0]
    b_pad, tm, steps = _choose_tiling(B)

    # Layout plumbing (fuses under jit): batch on lanes, pad to the grid size.
    xT = x.T                                                     # (2, B)
    if b_pad != B:
        xT = jnp.pad(xT, ((0, 0), (0, b_pad - B)))               # (2, b_pad)

    out_T = pl.pallas_call(
        _netd_kernel,
        out_shape=jax.ShapeDtypeStruct((1, b_pad), jnp.float32),
        grid_spec=pl.GridSpec(
            grid=(steps,),
            in_specs=[
                pl.BlockSpec((2, tm), lambda i: (0, i)),         # xT batch tile
                pl.BlockSpec((ndf, 6), lambda i: (0, 0)),        # param slab (resident)
                pl.BlockSpec((ndf, ndf), lambda i: (0, 0)),      # w2 (resident)
            ],
            out_specs=pl.BlockSpec((1, tm), lambda i: (0, i)),   # lane-dense output
        ),
        compiler_params=pltpu.CompilerParams(
            dimension_semantics=("parallel",)                    # megacore / v7x 2-TC
        ),
    )(xT, slab, w2)
    return out_T[:, :B].T                                        # (B, 1)


def netd_apply(x, params):
    """Convenience: raw PyTorch-layout params (re-packs the tiny slab each call)."""
    slab, w2 = prepare_netd_params(params)
    return netd_forward(x, slab, w2)


def init_netd_params(key, ndf):
    """Deterministic init mimicking PyTorch nn.Linear default: U(-1/sqrt(fan_in), +)."""
    ks = jax.random.split(key, 6)

    def linear(kw, kb, fan_in, fan_out):
        bound = 1.0 / jnp.sqrt(jnp.float32(fan_in))
        w = jax.random.uniform(kw, (fan_out, fan_in), jnp.float32, -bound, bound)
        b = jax.random.uniform(kb, (fan_out,), jnp.float32, -bound, bound)
        return w, b

    w1, b1 = linear(ks[0], ks[1], 2, ndf)
    w2, b2 = linear(ks[2], ks[3], ndf, ndf)
    w3, b3 = linear(ks[4], ks[5], ndf, 1)
    return (w1, b1, w2, b2, w3, b3)


if __name__ == "__main__":
    key = jax.random.PRNGKey(0)
    k_x, k_p = jax.random.split(key)

    ndf = 32    # hidden width of the discriminator
    B = 256     # batch of 2-D MoG points

    x = jax.random.normal(k_x, (B, 2), jnp.float32)
    params = init_netd_params(k_p, ndf)

    # Params packed once (hoisted), forward is one jitted dispatch.
    slab, w2 = prepare_netd_params(params)
    out = netd_forward(x, slab, w2)
    out = jax.block_until_ready(out)

    # Pure-JAX reference (PyTorch semantics: y = x @ W^T + b), view(-1, 1).
    w1, b1, _, b2, w3, b3 = params
    h1 = jnp.tanh(x @ w1.T + b1)
    h2 = jnp.tanh(h1 @ w2.T + b2)
    ref = jax.nn.sigmoid(h2 @ w3.T + b3).reshape(-1, 1)

    assert out.shape == (B, 1)
    assert jnp.allclose(out, ref, atol=1e-4, rtol=1e-5)

    # Also exercise a non-128-multiple batch to check the padded path.
    x_odd = jax.random.normal(k_x, (200, 2), jnp.float32)
    out_odd = jax.block_until_ready(netd_forward(x_odd, slab, w2))
    ref_odd = jax.nn.sigmoid(
        jnp.tanh(jnp.tanh(x_odd @ w1.T + b1) @ w2.T + b2) @ w3.T + b3
    ).reshape(-1, 1)
    assert out_odd.shape == (200, 1)
    assert jnp.allclose(out_odd, ref_odd, atol=1e-4, rtol=1e-5)

    print("KERNEL_OK")
</pallas_src>

<mosaic_0001>
module attributes {stable_mosaic.version = 11 : i64} {
  func.func @_netd_kernel(%arg0: i32, %arg1: memref<2x256xf32, #tpu.memory_space<vmem>>, %arg2: memref<32x6xf32, #tpu.memory_space<vmem>>, %arg3: memref<32x32xf32, #tpu.memory_space<vmem>>, %arg4: memref<1x256xf32, #tpu.memory_space<vmem>>) attributes {dimension_semantics = [#tpu.dimension_semantics<parallel>], iteration_bounds = array<i64: 1>, scalar_prefetch = 0 : i64, scratch_operands = 0 : i64, tpu.core_type = #tpu.core_type<tc>, window_params = [{transform_indices = @transform_0, window_bounds = array<i64: 2, 256>}, {pipeline_mode = #tpu.pipeline_mode<synchronous>, transform_indices = @transform_1, window_bounds = array<i64: 32, 6>}, {pipeline_mode = #tpu.pipeline_mode<synchronous>, transform_indices = @transform_2, window_bounds = array<i64: 32, 32>}, {transform_indices = @transform_3, window_bounds = array<i64: 1, 256>}]} {
    %c0 = arith.constant 0 : index
    %c0_0 = arith.constant 0 : index
    %0 = vector.load %arg1[%c0, %c0_0] : memref<2x256xf32, #tpu.memory_space<vmem>>, vector<2x256xf32>
    %c0_1 = arith.constant 0 : index
    %c0_2 = arith.constant 0 : index
    %1 = vector.load %arg2[%c0_1, %c0_2] : memref<32x6xf32, #tpu.memory_space<vmem>>, vector<32x6xf32>
    %2 = vector.extract_strided_slice %1 {offsets = [0, 0], sizes = [32, 1], strides = [1, 1]} : vector<32x6xf32> to vector<32x1xf32>
    %3 = vector.extract_strided_slice %1 {offsets = [0, 1], sizes = [32, 1], strides = [1, 1]} : vector<32x6xf32> to vector<32x1xf32>
    %4 = vector.extract_strided_slice %1 {offsets = [0, 2], sizes = [32, 1], strides = [1, 1]} : vector<32x6xf32> to vector<32x1xf32>
    %5 = vector.extract_strided_slice %1 {offsets = [0, 3], sizes = [32, 1], strides = [1, 1]} : vector<32x6xf32> to vector<32x1xf32>
    %6 = vector.extract_strided_slice %1 {offsets = [0, 4], sizes = [32, 1], strides = [1, 1]} : vector<32x6xf32> to vector<32x1xf32>
    %7 = vector.extract_strided_slice %1 {offsets = [0, 5], sizes = [1, 1], strides = [1, 1]} : vector<32x6xf32> to vector<1x1xf32>
    %8 = vector.extract_strided_slice %0 {offsets = [0, 0], sizes = [1, 256], strides = [1, 1]} : vector<2x256xf32> to vector<1x256xf32>
    %9 = vector.broadcast %2 : vector<32x1xf32> to vector<32x256xf32>
    %10 = vector.broadcast %8 : vector<1x256xf32> to vector<32x256xf32>
    %11 = arith.mulf %9, %10 : vector<32x256xf32>
    %12 = vector.extract_strided_slice %0 {offsets = [1, 0], sizes = [1, 256], strides = [1, 1]} : vector<2x256xf32> to vector<1x256xf32>
    %13 = vector.broadcast %3 : vector<32x1xf32> to vector<32x256xf32>
    %14 = vector.broadcast %12 : vector<1x256xf32> to vector<32x256xf32>
    %15 = arith.mulf %13, %14 : vector<32x256xf32>
    %16 = arith.addf %11, %15 : vector<32x256xf32>
    %17 = vector.broadcast %4 : vector<32x1xf32> to vector<32x256xf32>
    %18 = arith.addf %16, %17 : vector<32x256xf32>
    %19 = math.tanh %18 : vector<32x256xf32>
    %c0_3 = arith.constant 0 : index
    %c0_4 = arith.constant 0 : index
    %20 = vector.load %arg3[%c0_3, %c0_4] : memref<32x32xf32, #tpu.memory_space<vmem>>, vector<32x32xf32>
    %cst = arith.constant dense<0.000000e+00> : vector<32x256xf32>
    %21 = tpu.matmul %20, %19, %cst {dimension_numbers = #tpu.dot_dimension_numbers<[1], [0], [0], [1], [0, 0, 1, 1], [], []>} : vector<32x32xf32>, vector<32x256xf32>, vector<32x256xf32> -> vector<32x256xf32>
    %22 = vector.broadcast %5 : vector<32x1xf32> to vector<32x256xf32>
    %23 = arith.addf %21, %22 : vector<32x256xf32>
    %24 = math.tanh %23 : vector<32x256xf32>
    %25 = vector.broadcast %6 : vector<32x1xf32> to vector<32x256xf32>
    %26 = arith.mulf %25, %24 : vector<32x256xf32>
    %cst_5 = arith.constant dense<0.000000e+00> : vector<256xf32>
    %27 = vector.multi_reduction <add>, %26, %cst_5 [0] : vector<32x256xf32> to vector<256xf32>
    %28 = vector.shape_cast %27 : vector<256xf32> to vector<1x256xf32>
    %29 = vector.broadcast %7 : vector<1x1xf32> to vector<1x256xf32>
    %30 = arith.addf %28, %29 : vector<1x256xf32>
    %31 = arith.negf %30 : vector<1x256xf32>
    %32 = math.exp %31 : vector<1x256xf32>
    %cst_6 = arith.constant 1.000000e+00 : f32
    %33 = vector.broadcast %cst_6 : f32 to vector<1x256xf32>
    %34 = arith.addf %33, %32 : vector<1x256xf32>
    %35 = arith.divf %33, %34 : vector<1x256xf32>
    %c0_7 = arith.constant 0 : index
    %c0_8 = arith.constant 0 : index
    %36 = vector.load %arg4[%c0_7, %c0_8] : memref<1x256xf32, #tpu.memory_space<vmem>>, vector<1x256xf32>
    tpu.vector_store %arg4[%c0_7, %c0_8], %35 {strides = array<i32>} : memref<1x256xf32, #tpu.memory_space<vmem>>, vector<1x256xf32>,
    return
  }
  func.func @transform_0(%arg0: i32) -> (i32, i32) {
    %c0_i32 = arith.constant 0 : i32
    %c0_i32_0 = arith.constant 0 : i32
    return %c0_i32, %arg0 : i32, i32
  }
  func.func @transform_1(%arg0: i32) -> (i32, i32) {
    %c0_i32 = arith.constant 0 : i32
    %c0_i32_0 = arith.constant 0 : i32
    %c0_i32_1 = arith.constant 0 : i32
    return %c0_i32, %c0_i32_0 : i32, i32
  }
  func.func @transform_2(%arg0: i32) -> (i32, i32) {
    %c0_i32 = arith.constant 0 : i32
    %c0_i32_0 = arith.constant 0 : i32
    %c0_i32_1 = arith.constant 0 : i32
    return %c0_i32, %c0_i32_0 : i32, i32
  }
  func.func @transform_3(%arg0: i32) -> (i32, i32) {
    %c0_i32 = arith.constant 0 : i32
    %c0_i32_0 = arith.constant 0 : i32
    return %c0_i32, %arg0 : i32, i32
  }
}

</mosaic_0001>

<bundles_post_ra>
// kernel: netd_forward.1
= control target key start
LH: loop header
LB: loop body
LE: loop exit
PB: predicated region body
PF: predicated region fallthrough
CT: control target
= control target key end

     0   :  { %v479_v1 = vmov 1   ;;  %v480_v2 = vmov 0   ;;  %s560_s0 = inlined_call_operand.vmem [shape: f32[2,256], index: 0, kind: input, shape index: {}]   ;;  %s561_s1 = inlined_call_operand.vmem [shape: f32[32,6], index: 1, kind: input, shape index: {}]   ;;  %s562_s2 = inlined_call_operand.vmem [shape: f32[32,32], index: 2, kind: input, shape index: {}]   ;;  %s563_s3 = inlined_call_operand.hbm [shape: f32[1,256], index: 3, kind: output, shape index: {}]  }
   0x1   :  { %v16_v0 = vld [vmem:[%s561_s1] sm:$0xff]  ;;  %404 = vset.pattern.permute.xlu1 %v479_v1  ;;  %403 = vset.pattern.permute.xlu0 %v480_v2 }
   0x2   :  { %8 = vsyncpa [#allocation3], 0  ;;  %68 = vperm.xlu1 %404, %v16_v0   ;;  %22 = vperm.xlu0 %403, %v16_v0   ;;  %v17_v3 = vld [vmem:[%s561_s1 + $0x8] sm:$0xff]  ;;  %v18_v4 = vld [vmem:[%s561_s1 + $0x10] sm:$0xff]  ;;  %v481_v6 = vmov 2   ;;  %v482_v7 = vmov 0.0   ;;  %v41_v11 = vlaneseq }
   0x3   :  { %v19_v5 = vld [vmem:[%s561_s1 + $0x18] sm:$0xff]  ;;  %246 = vmatprep.mubr.f32.mxu0 %v482_v7  ;;  %258 = vmatprep.mubr.f32.mxu1 %v482_v7  ;;  %v483_v8 = vmov 3   ;;  %v484_v9 = vmov 4   ;;  %v485_v10 = vmov 5   ;;  %v15_v19 = vld [vmem:[%s560_s0] sm:$0xf] }
   0x4   :  { %v523_v12 = vshrl.u32 %v41_v11, 7  ;;  %vm169_vm0 = vcmask 261120   ;;  %vm359_vm1 = vcmp.lt.s32.totalorder %v41_v11, 256 }
   0x6   :  { %72 = vperm.xlu1 %404, %v17_v3   ;;  %27 = vperm.xlu0 %403, %v17_v3   ;;  %v85_v15 = vsub.s32 1, %v523_v12  ;;  %v89_v16 = vsub.s32 3, %v523_v12  ;;  %v43_v17 = vsub.s32 0, %v523_v12  ;;  %v47_v18 = vsub.s32 2, %v523_v12 }
   0x8   :  { %v86_v22 = vrot.slane %v15_v19, %v85_v15  ;;  %v90_v23 = vrot.slane %v15_v19, %v89_v16  ;;  %v44_v24 = vrot.slane %v15_v19, %v43_v17  ;;  %v48_v25 = vrot.slane %v15_v19, %v47_v18 }
   0xa   :  { %405 = vset.pattern.permute.xlu1 %v480_v2  ;;  %32 = vperm.xlu0 %403, %v18_v4   ;;  %v96_v28 = vrot.slane %v86_v22, %v85_v15  ;;  %v100_v29 = vrot.slane %v90_v23, %v85_v15  ;;  %v54_v30 = vrot.slane %v44_v24, %v43_v17  ;;  %v151_v22 = vld [vmem:[%s562_s2 + $0x10] sm:$0xff]  ;;  %v150_v23 = vld [vmem:[%s562_s2 + $0x8] sm:$0xff]  ;;  %v152_v24 = vld [vmem:[%s562_s2 + $0x18] sm:$0xff] }
   0xb   :  { %37 = vperm.xlu1 %405, %v19_v5   ;;  %v58_v31 = vrot.slane %v48_v25, %v43_v17 }
   0xe   :  { %406 = vset.pattern.permute.xlu0 %v479_v1 }
   0xf   :  { %407 = vset.pattern.permute.xlu1 %v479_v1  ;;  %76 = vperm.xlu0 %406, %v18_v4  }
  0x10   :  { %80 = vperm.xlu1 %407, %v19_v5  }
  0x13   :  { %409 = vset.pattern.permute.xlu0 %v481_v6 }
  0x14   :  { %408 = vset.pattern.permute.xlu1 %v481_v6  ;;  %122 = vperm.xlu0 %409, %v17_v3  }
  0x15   :  { %118 = vperm.xlu1 %408, %v16_v0  }
  0x18   :  { %410 = vset.pattern.permute.xlu0 %v483_v8 }
  0x19   :  { %126 = vperm.xlu1 %408, %v18_v4   ;;  %154 = vperm.xlu0 %410, %v16_v0  }
  0x1d   :  { %130 = vperm.xlu1 %408, %v19_v5   ;;  %166 = vperm.xlu0 %410, %v19_v5  }
  0x21   :  { %411 = vset.pattern.permute.xlu1 %v483_v8  ;;  %413 = vset.pattern.permute.xlu0 %v484_v9 }
  0x22   :  { %158 = vperm.xlu1 %411, %v17_v3   ;;  %284 = vperm.xlu0 %413, %v17_v3  }
  0x26   :  { %162 = vperm.xlu1 %411, %v18_v4   ;;  %414 = vset.pattern.permute.xlu0 %v485_v10 }
  0x27   :  { %322 = vperm.xlu0 %414, %v16_v0  }
  0x2a   :  { %412 = vset.pattern.permute.xlu1 %v484_v9 }
  0x2b   :  { %280 = vperm.xlu1 %412, %v16_v0  }
  0x2f   :  { %288 = vperm.xlu1 %412, %v18_v4  }
  0x33   :  { %292 = vperm.xlu1 %412, %v19_v5  }
  0x81   :  { %v69_v13 = vpop.permute.xlu1 %68  ;;  %v23_v14 = vpop.permute.xlu0 %22 }
  0x82   :  { %v101_v37 = vmul.f32 %v96_v28, %v69_v13  ;;  %v102_v38 = vmul.f32 %v100_v29, %v69_v13  ;;  %v59_v39 = vmul.f32 %v54_v30, %v23_v14  ;;  %v60_v40 = vmul.f32 %v58_v31, %v23_v14 }
  0x84   :  { %v109_v46 = vadd.f32 %v101_v37, %v59_v39  ;;  %v110_v47 = vadd.f32 %v102_v38, %v60_v40 }
  0x85   :  { %v73_v20 = vpop.permute.xlu1 %72  ;;  %v28_v21 = vpop.permute.xlu0 %27 }
  0x86   :  { %v103_v32 = vmul.f32 %v96_v28, %v73_v20  ;;  %v104_v33 = vmul.f32 %v100_v29, %v73_v20  ;;  %v61_v34 = vmul.f32 %v54_v30, %v28_v21  ;;  %v62_v35 = vmul.f32 %v58_v31, %v28_v21  ;;  %v149_v21 = vld [vmem:[%s562_s2] sm:$0xff]  ;;  %s487_s2 = smov [#allocation2]  }
  0x87   :  { %s368_s28 = sshll.u32 %s487_s2, 4  ;;  %s369_s28 = int_to_ptr.vmem [resolvable:$true] %s368_s28 }
  0x88   :  { %v111_v42 = vadd.f32 %v103_v32, %v61_v34  ;;  %v112_v43 = vadd.f32 %v104_v33, %v62_v35  ;;  %s455_s29 = scalar_lea.vmem %s369_s28, 32  ;;  %p460_p1 = scmp.lt.s32.totalorder %s369_s28, %s369_s28 }
  0x89   :  { %v33_v26 = vpop.permute.xlu0 %32  ;;  %p456_p0 = scmp.ne.s32.totalorder %s369_s28, %s455_s29  ;;  %p461_p2 = scmp.lt.s32.totalorder %s455_s29, %s455_s29 }
  0x8a   :  { %v38_v27 = vpop.permute.xlu1 %37  ;;  %v63_v52 = vmul.f32 %v54_v30, %v33_v26  ;;  %v64_v55 = vmul.f32 %v58_v31, %v33_v26 }
  0x8b   :  { %v65_v61 = vmul.f32 %v54_v30, %v38_v27  ;;  %v66_v62 = vmul.f32 %v58_v31, %v38_v27  ;;  %p462_p3 = por %p461_p2, %p460_p1 }
  0x8d   :  { %p463_p4 = pnand %p462_p3, %p456_p0 }
  0x8e   :  { %v77_v36 = vpop.permute.xlu0 %76 }
  0x8f   :  { %v81_v41 = vpop.permute.xlu1 %80  ;;  %v105_v44 = vmul.f32 %v96_v28, %v77_v36  ;;  %v106_v48 = vmul.f32 %v100_v29, %v77_v36 }
  0x90   :  { %v107_v56 = vmul.f32 %v96_v28, %v81_v41  ;;  %v108_v57 = vmul.f32 %v100_v29, %v81_v41 }
  0x91   :  { %v113_v58 = vadd.f32 %v105_v44, %v63_v52  ;;  %v114_v60 = vadd.f32 %v106_v48, %v64_v55 }
  0x92   :  { %v115_v1 = vadd.f32 %v107_v56, %v65_v61  ;;  %v116_v2 = vadd.f32 %v108_v57, %v66_v62 }
  0x93   :  { %v123_v45 = vpop.permute.xlu0 %122 }
  0x94   :  { %v135_v49 = vadd.f32 %v123_v45, %v111_v42  ;;  %v136_v50 = vadd.f32 %v123_v45, %v112_v43  ;;  %v119_v51 = vpop.permute.xlu1 %118 }
  0x95   :  { %v133_v53 = vadd.f32 %v119_v51, %v109_v46  ;;  %v134_v54 = vadd.f32 %v119_v51, %v110_v47 }
  0x96   :  { %415 = vtanh.f32 %v135_v49 }
  0x97   :  { %417 = vtanh.f32 %v136_v50 }
  0x98   :  { %419 = vtanh.f32 %v133_v53  ;;  %v127_v59 = vpop.permute.xlu1 %126  ;;  %v155_v26 = vpop.permute.xlu0 %154 }
  0x99   :  { %421 = vtanh.f32 %v134_v54  ;;  %v137_v63 = vadd.f32 %v127_v59, %v113_v58  ;;  %v138_v0 = vadd.f32 %v127_v59, %v114_v60 }
  0x9b   :  { %423 = vtanh.f32 %v137_v63 }
  0x9c   :  { %v131_v3 = vpop.permute.xlu1 %130  ;;  %425 = vtanh.f32 %v138_v0  ;;  %v167_v35 = vpop.permute.xlu0 %166 }
  0x9d   :  { %v139_v4 = vadd.f32 %v131_v3, %v115_v1  ;;  %v140_v5 = vadd.f32 %v131_v3, %v116_v2 }
  0x9f   :  { %427 = vtanh.f32 %v139_v4 }
  0xa0   :  { %v416_v6 = vpop.eup %415  ;;  %429 = vtanh.f32 %v140_v5 }
  0xa1   :  { %v418_v8 = vpop.eup %417  ;;  %v159_v25 = vpop.permute.xlu1 %158 }
  0xa2   :  { %v420_v9 = vpop.eup %419  ;;  %v285_v49 = vpop.permute.xlu0 %284 }
  0xa3   :  { %v422_v10 = vpop.eup %421  ;;  %v384_v13 = vpack.c.bf16 %v416_v6, %v420_v9 }
  0xa4   :  { %v382_v14 = vpack.c.bf16 %v418_v8, %v422_v10 }
  0xa5   :  { %v424_v15 = vpop.eup %423  ;;  %v163_v27 = vpop.permute.xlu1 %162 }
  0xa6   :  { %383 = vmatprep.subr.bf16.mxu0 %v382_v14  ;;  %390 = vmatprep.subr.bf16.mxu1 %v382_v14  ;;  %v426_v16 = vpop.eup %425 }
  0xa7   :  { %385 = vmatpush1.bf16.msra.mxu0 %v384_v13  ;;  %392 = vmatpush1.bf16.msra.mxu1 %v384_v13 }
  0xa9   :  { %v428_v17 = vpop.eup %427 }
  0xaa   :  { %v430_v18 = vpop.eup %429  ;;  %v388_v19 = vpack.c.bf16 %v428_v17, %v424_v15  ;;  %v281_v44 = vpop.permute.xlu1 %280 }
  0xab   :  { %v386_v20 = vpack.c.bf16 %v430_v18, %v426_v16  ;;  %v323_v18 = vpop.permute.xlu0 %322 }
  0xad   :  { %387 = vmatprep.subr.bf16.mxu0 %v386_v20  ;;  %391 = vmatprep.subr.bf16.mxu1 %v386_v20 }
  0xae   :  { %389 = vmatpush1.bf16.msra.mxu0 %v388_v19  ;;  %393 = vmatpush1.bf16.msra.mxu1 %v388_v19  ;;  %v289_v48 = vpop.permute.xlu1 %288 }
  0xb1   :  { %376 = vmatmul.mubr.msk.f32.vlgmr.msra.gmra.mrb[0].mxu0 %vm169_vm0, %v149_v21  ;;  %378 = vmatmul.mubr.msk.f32.vlgmr.msra.gmra.mrb[0].mxu1 %vm169_vm0, %v151_v22 }
  0xb2   :  { %252 = vmatprep.mubr.f32.mxu0 %v482_v7  ;;  %264 = vmatprep.mubr.f32.mxu1 %v482_v7  ;;  %v293_v61 = vpop.permute.xlu1 %292 }
  0xb5   :  { %377 = vmatmul.mubr.msk.f32.gmra.mrb[2].mxu0 %vm169_vm0, %v150_v23  ;;  %379 = vmatmul.mubr.msk.f32.gmra.mrb[2].mxu1 %vm169_vm0, %v152_v24 }
 0x184   :  { %v248_v28 = vpop.f32.mrb[0].mxu0  ;;  %v260_v29 = vpop.f32.mrb[0].mxu1 }
 0x185   :  { %v249_v30 = vadd.f32 %v248_v28, %v155_v26  ;;  %v261_v31 = vadd.f32 %v260_v29, %v163_v27  ;;  %v250_v32 = vpop.f32.mrb[1].mxu0  ;;  %v262_v33 = vpop.f32.mrb[1].mxu1 }
 0x186   :  { %v251_v7 = vadd.f32 %v250_v32, %v155_v26  ;;  %v263_v34 = vadd.f32 %v262_v33, %v163_v27 }
 0x187   :  { %431 = vtanh.f32 %v249_v30  ;;  %v486_v30 = vmov 1966171168  }
 0x188   :  { %433 = vtanh.f32 %v261_v31  ;;  %v254_v36 = vpop.f32.mrb[2].mxu0  ;;  %v266_v37 = vpop.f32.mrb[2].mxu1  ;;  %v343_v31 = vunpack.c.l.s4 %v486_v30 }
 0x189   :  { %435 = vtanh.f32 %v251_v7  ;;  %v255_v38 = vadd.f32 %v254_v36, %v159_v25  ;;  %v267_v39 = vadd.f32 %v266_v37, %v167_v35  ;;  %v256_v40 = vpop.f32.mrb[3].mxu0  ;;  %v268_v41 = vpop.f32.mrb[3].mxu1 }
 0x18a   :  { %437 = vtanh.f32 %v263_v34  ;;  %v257_v42 = vadd.f32 %v256_v40, %v159_v25  ;;  %v269_v43 = vadd.f32 %v268_v41, %v167_v35  ;;  %v344_v32 = vunpack.c.0.s8 %v343_v31 }
 0x18b   :  { %439 = vtanh.f32 %v255_v38 }
 0x18c   :  { %441 = vtanh.f32 %v267_v39  ;;  %v347_v7 = vsub.s32 %v344_v32, %v523_v12 }
 0x18d   :  { %443 = vtanh.f32 %v257_v42 }
 0x18e   :  { %445 = vtanh.f32 %v269_v43 }
 0x191   :  { %v432_v45 = vpop.eup %431 }
 0x192   :  { %v434_v46 = vpop.eup %433  ;;  %v295_v53 = vmul.f32 %v432_v45, %v281_v44 }
 0x193   :  { %v436_v47 = vpop.eup %435  ;;  %v299_v57 = vmul.f32 %v434_v46, %v289_v48 }
 0x194   :  { %v438_v50 = vpop.eup %437  ;;  %v296_v56 = vmul.f32 %v436_v47, %v281_v44 }
 0x195   :  { %v440_v51 = vpop.eup %439  ;;  %v300_v62 = vmul.f32 %v438_v50, %v289_v48 }
 0x196   :  { %v442_v52 = vpop.eup %441  ;;  %v297_v54 = vmul.f32 %v440_v51, %v285_v49 }
 0x197   :  { %v444_v55 = vpop.eup %443  ;;  %v301_v63 = vmul.f32 %v442_v52, %v293_v61 }
 0x198   :  { %v298_v58 = vmul.f32 %v444_v55, %v285_v49  ;;  %v303_v59 = vadd.f32 %v297_v54, %v295_v53  ;;  %v446_v60 = vpop.eup %445 }
 0x199   :  { %v302_v2 = vmul.f32 %v446_v60, %v293_v61 }
 0x19a   :  { %v304_v0 = vadd.f32 %v303_v59, %v299_v57  ;;  %v312_v1 = vadd.f32 %v298_v58, %v296_v56 }
 0x19c   :  { %v305_v3 = vadd.f32 %v304_v0, %v301_v63  ;;  %v313_v4 = vadd.f32 %v312_v1, %v300_v62 }
 0x19e   :  { %v314_v5 = vadd.f32 %v313_v4, %v302_v2  ;;  %v306_v6 = vrot.slane %v305_v3, 4 }
 0x1a0   :  { %v307_v8 = vadd.f32 %v306_v6, %v305_v3  ;;  %v315_v9 = vrot.slane %v314_v5, 4 }
 0x1a2   :  { %v308_v10 = vrot.slane %v307_v8, 2  ;;  %v316_v13 = vadd.f32 %v315_v9, %v314_v5 }
 0x1a4   :  { %v309_v14 = vadd.f32 %v308_v10, %v307_v8  ;;  %v317_v15 = vrot.slane %v316_v13, 2 }
 0x1a6   :  { %v310_v16 = vrot.slane %v309_v14, 1  ;;  %v318_v17 = vadd.f32 %v317_v15, %v316_v13 }
 0x1a8   :  { %v311_v19 = vadd.f32 %v310_v16, %v309_v14  ;;  %v319_v20 = vrot.slane %v318_v17, 1 }
 0x1aa   :  { %v320_v21 = vadd.f32 %v319_v20, %v318_v17  ;;  %v325_v22 = vadd.f32 %v323_v18, %v311_v19 }
 0x1ac   :  { %v326_v23 = vadd.f32 %v323_v18, %v320_v21  ;;  %v380_v24 = vmul.f32 -1.442695, %v325_v22 }
 0x1ae   :  { %447 = vpow2.f32 %v380_v24  ;;  %v381_v25 = vmul.f32 -1.442695, %v326_v23 }
 0x1b0   :  { %449 = vpow2.f32 %v381_v25 }
 0x1b8   :  { %v448_v26 = vpop.eup %447 }
 0x1b9   :  { %v333_v27 = vadd.f32 1.0, %v448_v26 }
 0x1ba   :  { %v450_v28 = vpop.eup %449 }
 0x1bb   :  { %v334_v29 = vadd.f32 1.0, %v450_v28  ;;  %451 = vrcp.f32 %v333_v27 }
 0x1bd   :  { %453 = vrcp.f32 %v334_v29 }
 0x1c5   :  { %v452_v33 = vpop.eup %451 }
 0x1c7   :  { %v454_v34 = vpop.eup %453 }
 0x1c8   :  { %v341_v35 = vcombine.low %v452_v33, %v454_v34 }
 0x1ca   :  { %v348_v36 = vrot.slane %v341_v35, %v347_v7 }
 0x1cc   :  { %v355_v37 = vrot.slane %v348_v36, %v347_v7 }
 0x1ce   :  { %361 = vst.msk [vmem:[#allocation2] sm:$0x3] %vm359_vm1, %v355_v37 }
 0x1cf   :  { %466 = shalt.err (!%p463_p4)
}
 0x1d0   :  { %s467_s5 = scalar_lea.hbm %s563_s3, 32 }
 0x1d1   :  { %p468_p5 = scmp.ne.s32.totalorder %s563_s3, %s467_s5  ;;  %p471_p6 = scmp.lt.u32.totalorder %s467_s5, %s563_s3 }
 0x1d3   :  { %p473_p7 = pnand %p471_p6, %p468_p5 }
 0x1d5   :  { %476 = shalt.err (!%p473_p7)
}
 0x1d6   :  { %371 = dma.vmem_to_hbm [thread:$0]  %s369_s28, 32, %s563_s3, [#allocation3]  }
 0x1d7   :  { %477 = dma.done.wait [#allocation3], 32  }
 0x1d8   :  { %478 = vsyncadd [#allocation3], 4294967264 }
 0x1d9   :  { %375 = vsyncpa [#allocation3], 1 }

</bundles_post_ra>
